<compile_context>
chip_gen: v7x
topology: tpu7x:2x2x1
jax: 0.10.0
libtpu: 0.0.40
codegen_flags: <defaults>
</compile_context>

<pallas_src>
import functools
import math

import jax
import jax.numpy as jnp
from jax import lax
from jax.experimental import pallas as pl
from jax.experimental.pallas import tpu as pltpu


def _elu(x):
    # torch F.elu (alpha=1); exp input clamped at 0 so the unselected branch of
    # the where never overflows.
    return jnp.where(x > 0, x, jnp.exp(jnp.minimum(x, 0.0)) - 1.0)


def _attention_heads(hf, f2_row, adj, *, alpha, batch, nodes, feat):
    """Per-batch masked graph attention.

    hf     : (B*N, feat+1)  columns [h | f1], f1_i = h_i . a[:feat]
    f2_row : (1, B*N)       f2_j = h_j . a[feat:]
    adj    : (N, N)
    Returns a list of B arrays of shape (N, feat):  softmax(mask(e)) @ h.
    """
    outs = []
    for b in range(batch):            # B is tiny & static -> unrolled at trace
        lo = b * nodes
        h_b = hf[lo:lo + nodes, :feat]                  # (N, feat)
        f1_b = hf[lo:lo + nodes, feat:feat + 1]         # (N, 1)
        f2_b = f2_row[:, lo:lo + nodes]                 # (1, N)
        # e[i, j] = LeakyReLU(h_i . a[:F] + h_j . a[F:])
        e = f1_b + f2_b                                 # (N, N)
        e = jnp.where(e > 0, e, alpha * e)              # LeakyReLU
        masked = jnp.where(adj > 0, e, jnp.float32(-9e15))
        m = jnp.max(masked, axis=1, keepdims=True)
        p = jnp.exp(masked - m)
        inv = pl.reciprocal(jnp.sum(p, axis=1, keepdims=True), approx=True)
        att = p * inv                                   # softmax over neighbors
        # TODO(synk): training-mode dropout (p=0.6) on attention omitted (eval).
        outs.append(jnp.dot(att, h_b, preferred_element_type=jnp.float32))
    return outs


def _bgat_kernel(x_ref, adj_ref, w1_ref, wa2_1_ref, w2_ref, wa2_2_ref, o_ref, *,
                 alpha, batch, nodes, hid, fout):
    x = x_ref[...]                                      # (B*N, Fin)
    adj = adj_ref[...]                                  # (N, N)

    # ---------------- layer 1: hidden attention head (concat=True -> ELU) ----
    h1f = jnp.dot(x, w1_ref[...],
                  preferred_element_type=jnp.float32)   # (B*N, hid+1)
    f2_1 = lax.dot_general(wa2_1_ref[...], x,
                           dimension_numbers=(((1,), (1,)), ((), ())),
                           preferred_element_type=jnp.float32)   # (1, B*N)
    h1_list = _attention_heads(h1f, f2_1, adj, alpha=alpha, batch=batch,
                               nodes=nodes, feat=hid)
    h1p = _elu(jnp.concatenate(h1_list, axis=0))        # (B*N, hid)

    # ---------------- layer 2: out_att (concat=False) + ELU + log_softmax ----
    h2f = jnp.dot(h1p, w2_ref[...],
                  preferred_element_type=jnp.float32)   # (B*N, fout+1)
    f2_2 = lax.dot_general(wa2_2_ref[...], h1p,
                           dimension_numbers=(((1,), (1,)), ((), ())),
                           preferred_element_type=jnp.float32)   # (1, B*N)
    h2_list = _attention_heads(h2f, f2_2, adj, alpha=alpha, batch=batch,
                               nodes=nodes, feat=fout)
    for b in range(batch):
        hb = _elu(h2_list[b])                           # (N, fout)
        # F.log_softmax over the node axis (torch dim=1)
        m2 = jnp.max(hb, axis=0, keepdims=True)
        z = hb - m2
        lse = jnp.log(jnp.sum(jnp.exp(z), axis=0, keepdims=True))
        o_ref[b] = (z - lse).astype(o_ref.dtype)


def bgat_forward(x, adj, params, alpha=0.2):
    heads, (W2, a2) = params
    assert len(heads) == 1, "fused kernel implements heads_num=1 (module default)"
    # TODO(synk): multi-head (heads_num>1) fusion — concat heads lane-dense
    # inside the kernel instead of one call per head.
    W1, a1 = heads[0]

    B, N, Fin = x.shape
    hid = W1.shape[1]
    fout = W2.shape[1]
    f32 = jnp.float32

    W1 = W1.astype(f32); a1 = a1.astype(f32)
    W2 = W2.astype(f32); a2 = a2.astype(f32)

    # Fold f1 = h @ a[:F] into the main weight matmul as an extra column, and
    # precompute (W @ a[F:])^T so the kernel gets f2 directly as a row
    # (no in-kernel transpose, no skinny per-layer a1/a2 DMAs).
    w1_ext = jnp.concatenate([W1, W1 @ a1[:hid]], axis=1)      # (Fin, hid+1)
    wa2_1 = (W1 @ a1[hid:]).T                                   # (1, Fin)
    w2_ext = jnp.concatenate([W2, W2 @ a2[:fout]], axis=1)      # (hid, fout+1)
    wa2_2 = (W2 @ a2[fout:]).T                                   # (1, hid)

    # residual = x  (computed but unused in the reference)
    # F.dropout(x) -> identity in eval mode.
    x2d = x.reshape(B * N, Fin).astype(f32)
    adj = adj.astype(f32)

    kernel = functools.partial(_bgat_kernel, alpha=alpha, batch=B, nodes=N,
                               hid=hid, fout=fout)
    return pl.pallas_call(
        kernel,
        out_shape=jax.ShapeDtypeStruct((B, N, fout), f32),
        grid=(1,),
        in_specs=[
            pl.BlockSpec((B * N, Fin), lambda i: (0, 0)),
            pl.BlockSpec((N, N), lambda i: (0, 0)),
            pl.BlockSpec((Fin, hid + 1), lambda i: (0, 0)),
            pl.BlockSpec((1, Fin), lambda i: (0, 0)),
            pl.BlockSpec((hid, fout + 1), lambda i: (0, 0)),
            pl.BlockSpec((1, hid), lambda i: (0, 0)),
        ],
        out_specs=pl.BlockSpec((B, N, fout), lambda i: (0, 0, 0)),
        compiler_params=pltpu.CompilerParams(
            dimension_semantics=("arbitrary",)),
    )(x2d, adj, w1_ext, wa2_1, w2_ext, wa2_2)


def xavier_uniform(key, shape, gain=1.414):
    fan_in, fan_out = shape
    bound = gain * math.sqrt(6.0 / (fan_in + fan_out))
    return jax.random.uniform(key, shape, jnp.float32, minval=-bound, maxval=bound)


def init_bgat_params(key, in_features, hid_features, out_features, heads_num=1):
    keys = jax.random.split(key, 2 * heads_num + 2)
    heads = []
    for i in range(heads_num):
        W = xavier_uniform(keys[2 * i], (in_features, hid_features))
        a = xavier_uniform(keys[2 * i + 1], (2 * hid_features, 1))
        heads.append((W, a))
    W_out = xavier_uniform(keys[-2], (hid_features * heads_num, out_features))
    a_out = xavier_uniform(keys[-1], (2 * out_features, 1))
    return heads, (W_out, a_out)


if __name__ == "__main__":
    B, N = 2, 8
    in_features, hid_features, out_features = 16, 32, 16

    key = jax.random.PRNGKey(0)
    kx, kadj, kp = jax.random.split(key, 3)

    x = jax.random.normal(kx, (B, N, in_features), dtype=jnp.float32)
    adj = (jax.random.uniform(kadj, (N, N)) > 0.5).astype(jnp.float32)
    adj = jnp.maximum(adj, jnp.eye(N, dtype=jnp.float32))   # ensure self-loops

    params = init_bgat_params(kp, in_features, hid_features, out_features,
                              heads_num=1)

    out = bgat_forward(x, adj, params)
    jax.block_until_ready(out)
    assert out.shape == (B, N, out_features)
    assert out.dtype == jnp.float32
    print("KERNEL_OK")
</pallas_src>

<mosaic_0001>
module attributes {stable_mosaic.version = 11 : i64} {
  func.func @_bgat_kernel(%arg0: i32, %arg1: memref<16x16xf32, #tpu.memory_space<vmem>>, %arg2: memref<8x8xf32, #tpu.memory_space<vmem>>, %arg3: memref<16x33xf32, #tpu.memory_space<vmem>>, %arg4: memref<1x16xf32, #tpu.memory_space<vmem>>, %arg5: memref<32x17xf32, #tpu.memory_space<vmem>>, %arg6: memref<1x32xf32, #tpu.memory_space<vmem>>, %arg7: memref<2x8x16xf32, #tpu.memory_space<vmem>>) attributes {dimension_semantics = [#tpu.dimension_semantics<arbitrary>], iteration_bounds = array<i64: 1>, scalar_prefetch = 0 : i64, scratch_operands = 0 : i64, tpu.core_type = #tpu.core_type<tc>, window_params = [{pipeline_mode = #tpu.pipeline_mode<synchronous>, transform_indices = @transform_0, window_bounds = array<i64: 16, 16>}, {pipeline_mode = #tpu.pipeline_mode<synchronous>, transform_indices = @transform_1, window_bounds = array<i64: 8, 8>}, {pipeline_mode = #tpu.pipeline_mode<synchronous>, transform_indices = @transform_2, window_bounds = array<i64: 16, 33>}, {pipeline_mode = #tpu.pipeline_mode<synchronous>, transform_indices = @transform_3, window_bounds = array<i64: 1, 16>}, {pipeline_mode = #tpu.pipeline_mode<synchronous>, transform_indices = @transform_4, window_bounds = array<i64: 32, 17>}, {pipeline_mode = #tpu.pipeline_mode<synchronous>, transform_indices = @transform_5, window_bounds = array<i64: 1, 32>}, {pipeline_mode = #tpu.pipeline_mode<synchronous>, transform_indices = @transform_6, window_bounds = array<i64: 2, 8, 16>}]} {
    %c0 = arith.constant 0 : index
    %c0_0 = arith.constant 0 : index
    %0 = vector.load %arg1[%c0, %c0_0] : memref<16x16xf32, #tpu.memory_space<vmem>>, vector<16x16xf32>
    %c0_1 = arith.constant 0 : index
    %c0_2 = arith.constant 0 : index
    %1 = vector.load %arg2[%c0_1, %c0_2] : memref<8x8xf32, #tpu.memory_space<vmem>>, vector<8x8xf32>
    %c0_3 = arith.constant 0 : index
    %c0_4 = arith.constant 0 : index
    %2 = vector.load %arg3[%c0_3, %c0_4] : memref<16x33xf32, #tpu.memory_space<vmem>>, vector<16x33xf32>
    %cst = arith.constant dense<0.000000e+00> : vector<16x33xf32>
    %3 = tpu.matmul %0, %2, %cst {dimension_numbers = #tpu.dot_dimension_numbers<[1], [0], [0], [1], [0, 0, 1, 1], [], []>} : vector<16x16xf32>, vector<16x33xf32>, vector<16x33xf32> -> vector<16x33xf32>
    %c0_5 = arith.constant 0 : index
    %c0_6 = arith.constant 0 : index
    %4 = vector.load %arg4[%c0_5, %c0_6] : memref<1x16xf32, #tpu.memory_space<vmem>>, vector<1x16xf32>
    %cst_7 = arith.constant dense<0.000000e+00> : vector<1x16xf32>
    %5 = tpu.matmul %4, %0, %cst_7 {dimension_numbers = #tpu.dot_dimension_numbers<[1], [1], [0], [0], [0, 0, 1, 0], [], []>} : vector<1x16xf32>, vector<16x16xf32>, vector<1x16xf32> -> vector<1x16xf32>
    %6 = vector.extract_strided_slice %3 {offsets = [0, 0], sizes = [8, 32], strides = [1, 1]} : vector<16x33xf32> to vector<8x32xf32>
    %7 = vector.extract_strided_slice %3 {offsets = [0, 32], sizes = [8, 1], strides = [1, 1]} : vector<16x33xf32> to vector<8x1xf32>
    %8 = vector.extract_strided_slice %5 {offsets = [0, 0], sizes = [1, 8], strides = [1, 1]} : vector<1x16xf32> to vector<1x8xf32>
    %9 = vector.broadcast %7 : vector<8x1xf32> to vector<8x8xf32>
    %10 = vector.broadcast %8 : vector<1x8xf32> to vector<8x8xf32>
    %11 = arith.addf %9, %10 : vector<8x8xf32>
    %cst_8 = arith.constant 0.000000e+00 : f32
    %12 = vector.broadcast %cst_8 : f32 to vector<8x8xf32>
    %13 = arith.cmpf ogt, %11, %12 : vector<8x8xf32>
    %cst_9 = arith.constant 2.000000e-01 : f32
    %14 = vector.broadcast %cst_9 : f32 to vector<8x8xf32>
    %15 = arith.mulf %14, %11 : vector<8x8xf32>
    %16 = arith.select %13, %11, %15 : vector<8x8xi1>, vector<8x8xf32>
    %cst_10 = arith.constant 0.000000e+00 : f32
    %17 = vector.broadcast %cst_10 : f32 to vector<8x8xf32>
    %18 = arith.cmpf ogt, %1, %17 : vector<8x8xf32>
    %cst_11 = arith.constant -9.000000e+15 : f32
    %19 = vector.broadcast %cst_11 : f32 to vector<8x8xf32>
    %20 = arith.select %18, %16, %19 : vector<8x8xi1>, vector<8x8xf32>
    %cst_12 = arith.constant dense<0xFF800000> : vector<8xf32>
    %21 = vector.multi_reduction <maximumf>, %20, %cst_12 [1] : vector<8x8xf32> to vector<8xf32>
    %22 = vector.shape_cast %21 : vector<8xf32> to vector<8x1xf32>
    %23 = vector.broadcast %22 : vector<8x1xf32> to vector<8x8xf32>
    %24 = arith.subf %20, %23 : vector<8x8xf32>
    %25 = math.exp %24 : vector<8x8xf32>
    %cst_13 = arith.constant dense<0.000000e+00> : vector<8xf32>
    %26 = vector.multi_reduction <add>, %25, %cst_13 [1] : vector<8x8xf32> to vector<8xf32>
    %27 = vector.shape_cast %26 : vector<8xf32> to vector<8x1xf32>
    %28 = tpu.reciprocal %27 {approx = true} : vector<8x1xf32> -> vector<8x1xf32>
    %29 = vector.broadcast %28 : vector<8x1xf32> to vector<8x8xf32>
    %30 = arith.mulf %25, %29 : vector<8x8xf32>
    %cst_14 = arith.constant dense<0.000000e+00> : vector<8x32xf32>
    %31 = tpu.matmul %30, %6, %cst_14 {dimension_numbers = #tpu.dot_dimension_numbers<[1], [0], [0], [1], [0, 0, 1, 1], [], []>} : vector<8x8xf32>, vector<8x32xf32>, vector<8x32xf32> -> vector<8x32xf32>
    %32 = vector.extract_strided_slice %3 {offsets = [8, 0], sizes = [8, 32], strides = [1, 1]} : vector<16x33xf32> to vector<8x32xf32>
    %33 = vector.extract_strided_slice %3 {offsets = [8, 32], sizes = [8, 1], strides = [1, 1]} : vector<16x33xf32> to vector<8x1xf32>
    %34 = vector.extract_strided_slice %5 {offsets = [0, 8], sizes = [1, 8], strides = [1, 1]} : vector<1x16xf32> to vector<1x8xf32>
    %35 = vector.broadcast %33 : vector<8x1xf32> to vector<8x8xf32>
    %36 = vector.broadcast %34 : vector<1x8xf32> to vector<8x8xf32>
    %37 = arith.addf %35, %36 : vector<8x8xf32>
    %cst_15 = arith.constant 0.000000e+00 : f32
    %38 = vector.broadcast %cst_15 : f32 to vector<8x8xf32>
    %39 = arith.cmpf ogt, %37, %38 : vector<8x8xf32>
    %cst_16 = arith.constant 2.000000e-01 : f32
    %40 = vector.broadcast %cst_16 : f32 to vector<8x8xf32>
    %41 = arith.mulf %40, %37 : vector<8x8xf32>
    %42 = arith.select %39, %37, %41 : vector<8x8xi1>, vector<8x8xf32>
    %cst_17 = arith.constant 0.000000e+00 : f32
    %43 = vector.broadcast %cst_17 : f32 to vector<8x8xf32>
    %44 = arith.cmpf ogt, %1, %43 : vector<8x8xf32>
    %cst_18 = arith.constant -9.000000e+15 : f32
    %45 = vector.broadcast %cst_18 : f32 to vector<8x8xf32>
    %46 = arith.select %44, %42, %45 : vector<8x8xi1>, vector<8x8xf32>
    %cst_19 = arith.constant dense<0xFF800000> : vector<8xf32>
    %47 = vector.multi_reduction <maximumf>, %46, %cst_19 [1] : vector<8x8xf32> to vector<8xf32>
    %48 = vector.shape_cast %47 : vector<8xf32> to vector<8x1xf32>
    %49 = vector.broadcast %48 : vector<8x1xf32> to vector<8x8xf32>
    %50 = arith.subf %46, %49 : vector<8x8xf32>
    %51 = math.exp %50 : vector<8x8xf32>
    %cst_20 = arith.constant dense<0.000000e+00> : vector<8xf32>
    %52 = vector.multi_reduction <add>, %51, %cst_20 [1] : vector<8x8xf32> to vector<8xf32>
    %53 = vector.shape_cast %52 : vector<8xf32> to vector<8x1xf32>
    %54 = tpu.reciprocal %53 {approx = true} : vector<8x1xf32> -> vector<8x1xf32>
    %55 = vector.broadcast %54 : vector<8x1xf32> to vector<8x8xf32>
    %56 = arith.mulf %51, %55 : vector<8x8xf32>
    %cst_21 = arith.constant dense<0.000000e+00> : vector<8x32xf32>
    %57 = tpu.matmul %56, %32, %cst_21 {dimension_numbers = #tpu.dot_dimension_numbers<[1], [0], [0], [1], [0, 0, 1, 1], [], []>} : vector<8x8xf32>, vector<8x32xf32>, vector<8x32xf32> -> vector<8x32xf32>
    %58 = tpu.concatenate %31, %57 in 0 : vector<8x32xf32>, vector<8x32xf32> -> vector<16x32xf32>
    %cst_22 = arith.constant 0.000000e+00 : f32
    %59 = vector.broadcast %cst_22 : f32 to vector<16x32xf32>
    %60 = arith.cmpf ogt, %58, %59 : vector<16x32xf32>
    %cst_23 = arith.constant 0.000000e+00 : f32
    %61 = vector.broadcast %cst_23 : f32 to vector<16x32xf32>
    %62 = arith.minimumf %58, %61 : vector<16x32xf32>
    %63 = math.exp %62 : vector<16x32xf32>
    %cst_24 = arith.constant 1.000000e+00 : f32
    %64 = vector.broadcast %cst_24 : f32 to vector<16x32xf32>
    %65 = arith.subf %63, %64 : vector<16x32xf32>
    %66 = arith.select %60, %58, %65 : vector<16x32xi1>, vector<16x32xf32>
    %c0_25 = arith.constant 0 : index
    %c0_26 = arith.constant 0 : index
    %67 = vector.load %arg5[%c0_25, %c0_26] : memref<32x17xf32, #tpu.memory_space<vmem>>, vector<32x17xf32>
    %cst_27 = arith.constant dense<0.000000e+00> : vector<16x17xf32>
    %68 = tpu.matmul %66, %67, %cst_27 {dimension_numbers = #tpu.dot_dimension_numbers<[1], [0], [0], [1], [0, 0, 1, 1], [], []>} : vector<16x32xf32>, vector<32x17xf32>, vector<16x17xf32> -> vector<16x17xf32>
    %c0_28 = arith.constant 0 : index
    %c0_29 = arith.constant 0 : index
    %69 = vector.load %arg6[%c0_28, %c0_29] : memref<1x32xf32, #tpu.memory_space<vmem>>, vector<1x32xf32>
    %cst_30 = arith.constant dense<0.000000e+00> : vector<1x16xf32>
    %70 = tpu.matmul %69, %66, %cst_30 {dimension_numbers = #tpu.dot_dimension_numbers<[1], [1], [0], [0], [0, 0, 1, 0], [], []>} : vector<1x32xf32>, vector<16x32xf32>, vector<1x16xf32> -> vector<1x16xf32>
    %71 = vector.extract_strided_slice %68 {offsets = [0, 0], sizes = [8, 16], strides = [1, 1]} : vector<16x17xf32> to vector<8x16xf32>
    %72 = vector.extract_strided_slice %68 {offsets = [0, 16], sizes = [8, 1], strides = [1, 1]} : vector<16x17xf32> to vector<8x1xf32>
    %73 = vector.extract_strided_slice %70 {offsets = [0, 0], sizes = [1, 8], strides = [1, 1]} : vector<1x16xf32> to vector<1x8xf32>
    %74 = vector.broadcast %72 : vector<8x1xf32> to vector<8x8xf32>
    %75 = vector.broadcast %73 : vector<1x8xf32> to vector<8x8xf32>
    %76 = arith.addf %74, %75 : vector<8x8xf32>
    %cst_31 = arith.constant 0.000000e+00 : f32
    %77 = vector.broadcast %cst_31 : f32 to vector<8x8xf32>
    %78 = arith.cmpf ogt, %76, %77 : vector<8x8xf32>
    %cst_32 = arith.constant 2.000000e-01 : f32
    %79 = vector.broadcast %cst_32 : f32 to vector<8x8xf32>
    %80 = arith.mulf %79, %76 : vector<8x8xf32>
    %81 = arith.select %78, %76, %80 : vector<8x8xi1>, vector<8x8xf32>
    %cst_33 = arith.constant 0.000000e+00 : f32
    %82 = vector.broadcast %cst_33 : f32 to vector<8x8xf32>
    %83 = arith.cmpf ogt, %1, %82 : vector<8x8xf32>
    %cst_34 = arith.constant -9.000000e+15 : f32
    %84 = vector.broadcast %cst_34 : f32 to vector<8x8xf32>
    %85 = arith.select %83, %81, %84 : vector<8x8xi1>, vector<8x8xf32>
    %cst_35 = arith.constant dense<0xFF800000> : vector<8xf32>
    %86 = vector.multi_reduction <maximumf>, %85, %cst_35 [1] : vector<8x8xf32> to vector<8xf32>
    %87 = vector.shape_cast %86 : vector<8xf32> to vector<8x1xf32>
    %88 = vector.broadcast %87 : vector<8x1xf32> to vector<8x8xf32>
    %89 = arith.subf %85, %88 : vector<8x8xf32>
    %90 = math.exp %89 : vector<8x8xf32>
    %cst_36 = arith.constant dense<0.000000e+00> : vector<8xf32>
    %91 = vector.multi_reduction <add>, %90, %cst_36 [1] : vector<8x8xf32> to vector<8xf32>
    %92 = vector.shape_cast %91 : vector<8xf32> to vector<8x1xf32>
    %93 = tpu.reciprocal %92 {approx = true} : vector<8x1xf32> -> vector<8x1xf32>
    %94 = vector.broadcast %93 : vector<8x1xf32> to vector<8x8xf32>
    %95 = arith.mulf %90, %94 : vector<8x8xf32>
    %cst_37 = arith.constant dense<0.000000e+00> : vector<8x16xf32>
    %96 = tpu.matmul %95, %71, %cst_37 {dimension_numbers = #tpu.dot_dimension_numbers<[1], [0], [0], [1], [0, 0, 1, 1], [], []>} : vector<8x8xf32>, vector<8x16xf32>, vector<8x16xf32> -> vector<8x16xf32>
    %97 = vector.extract_strided_slice %68 {offsets = [8, 0], sizes = [8, 16], strides = [1, 1]} : vector<16x17xf32> to vector<8x16xf32>
    %98 = vector.extract_strided_slice %68 {offsets = [8, 16], sizes = [8, 1], strides = [1, 1]} : vector<16x17xf32> to vector<8x1xf32>
    %99 = vector.extract_strided_slice %70 {offsets = [0, 8], sizes = [1, 8], strides = [1, 1]} : vector<1x16xf32> to vector<1x8xf32>
    %100 = vector.broadcast %98 : vector<8x1xf32> to vector<8x8xf32>
    %101 = vector.broadcast %99 : vector<1x8xf32> to vector<8x8xf32>
    %102 = arith.addf %100, %101 : vector<8x8xf32>
    %cst_38 = arith.constant 0.000000e+00 : f32
    %103 = vector.broadcast %cst_38 : f32 to vector<8x8xf32>
    %104 = arith.cmpf ogt, %102, %103 : vector<8x8xf32>
    %cst_39 = arith.constant 2.000000e-01 : f32
    %105 = vector.broadcast %cst_39 : f32 to vector<8x8xf32>
    %106 = arith.mulf %105, %102 : vector<8x8xf32>
    %107 = arith.select %104, %102, %106 : vector<8x8xi1>, vector<8x8xf32>
    %cst_40 = arith.constant 0.000000e+00 : f32
    %108 = vector.broadcast %cst_40 : f32 to vector<8x8xf32>
    %109 = arith.cmpf ogt, %1, %108 : vector<8x8xf32>
    %cst_41 = arith.constant -9.000000e+15 : f32
    %110 = vector.broadcast %cst_41 : f32 to vector<8x8xf32>
    %111 = arith.select %109, %107, %110 : vector<8x8xi1>, vector<8x8xf32>
    %cst_42 = arith.constant dense<0xFF800000> : vector<8xf32>
    %112 = vector.multi_reduction <maximumf>, %111, %cst_42 [1] : vector<8x8xf32> to vector<8xf32>
    %113 = vector.shape_cast %112 : vector<8xf32> to vector<8x1xf32>
    %114 = vector.broadcast %113 : vector<8x1xf32> to vector<8x8xf32>
    %115 = arith.subf %111, %114 : vector<8x8xf32>
    %116 = math.exp %115 : vector<8x8xf32>
    %cst_43 = arith.constant dense<0.000000e+00> : vector<8xf32>
    %117 = vector.multi_reduction <add>, %116, %cst_43 [1] : vector<8x8xf32> to vector<8xf32>
    %118 = vector.shape_cast %117 : vector<8xf32> to vector<8x1xf32>
    %119 = tpu.reciprocal %118 {approx = true} : vector<8x1xf32> -> vector<8x1xf32>
    %120 = vector.broadcast %119 : vector<8x1xf32> to vector<8x8xf32>
    %121 = arith.mulf %116, %120 : vector<8x8xf32>
    %cst_44 = arith.constant dense<0.000000e+00> : vector<8x16xf32>
    %122 = tpu.matmul %121, %97, %cst_44 {dimension_numbers = #tpu.dot_dimension_numbers<[1], [0], [0], [1], [0, 0, 1, 1], [], []>} : vector<8x8xf32>, vector<8x16xf32>, vector<8x16xf32> -> vector<8x16xf32>
    %cst_45 = arith.constant 0.000000e+00 : f32
    %123 = vector.broadcast %cst_45 : f32 to vector<8x16xf32>
    %124 = arith.cmpf ogt, %96, %123 : vector<8x16xf32>
    %cst_46 = arith.constant 0.000000e+00 : f32
    %125 = vector.broadcast %cst_46 : f32 to vector<8x16xf32>
    %126 = arith.minimumf %96, %125 : vector<8x16xf32>
    %127 = math.exp %126 : vector<8x16xf32>
    %cst_47 = arith.constant 1.000000e+00 : f32
    %128 = vector.broadcast %cst_47 : f32 to vector<8x16xf32>
    %129 = arith.subf %127, %128 : vector<8x16xf32>
    %130 = arith.select %124, %96, %129 : vector<8x16xi1>, vector<8x16xf32>
    %cst_48 = arith.constant dense<0xFF800000> : vector<16xf32>
    %131 = vector.multi_reduction <maximumf>, %130, %cst_48 [0] : vector<8x16xf32> to vector<16xf32>
    %132 = vector.shape_cast %131 : vector<16xf32> to vector<1x16xf32>
    %133 = vector.broadcast %132 : vector<1x16xf32> to vector<8x16xf32>
    %134 = arith.subf %130, %133 : vector<8x16xf32>
    %135 = math.exp %134 : vector<8x16xf32>
    %cst_49 = arith.constant dense<0.000000e+00> : vector<16xf32>
    %136 = vector.multi_reduction <add>, %135, %cst_49 [0] : vector<8x16xf32> to vector<16xf32>
    %137 = vector.shape_cast %136 : vector<16xf32> to vector<1x16xf32>
    %138 = math.log %137 : vector<1x16xf32>
    %139 = vector.broadcast %138 : vector<1x16xf32> to vector<8x16xf32>
    %140 = arith.subf %134, %139 : vector<8x16xf32>
    %c0_50 = arith.constant 0 : index
    %c0_51 = arith.constant 0 : index
    %c0_52 = arith.constant 0 : index
    %141 = vector.load %arg7[%c0_50, %c0_51, %c0_52] : memref<2x8x16xf32, #tpu.memory_space<vmem>>, vector<1x8x16xf32>
    %142 = vector.shape_cast %141 : vector<1x8x16xf32> to vector<8x16xf32>
    %143 = vector.shape_cast %140 : vector<8x16xf32> to vector<1x8x16xf32>
    tpu.vector_store %arg7[%c0_50, %c0_51, %c0_52], %143 {strides = array<i32>} : memref<2x8x16xf32, #tpu.memory_space<vmem>>, vector<1x8x16xf32>,
    %cst_53 = arith.constant 0.000000e+00 : f32
    %144 = vector.broadcast %cst_53 : f32 to vector<8x16xf32>
    %145 = arith.cmpf ogt, %122, %144 : vector<8x16xf32>
    %cst_54 = arith.constant 0.000000e+00 : f32
    %146 = vector.broadcast %cst_54 : f32 to vector<8x16xf32>
    %147 = arith.minimumf %122, %146 : vector<8x16xf32>
    %148 = math.exp %147 : vector<8x16xf32>
    %cst_55 = arith.constant 1.000000e+00 : f32
    %149 = vector.broadcast %cst_55 : f32 to vector<8x16xf32>
    %150 = arith.subf %148, %149 : vector<8x16xf32>
    %151 = arith.select %145, %122, %150 : vector<8x16xi1>, vector<8x16xf32>
    %cst_56 = arith.constant dense<0xFF800000> : vector<16xf32>
    %152 = vector.multi_reduction <maximumf>, %151, %cst_56 [0] : vector<8x16xf32> to vector<16xf32>
    %153 = vector.shape_cast %152 : vector<16xf32> to vector<1x16xf32>
    %154 = vector.broadcast %153 : vector<1x16xf32> to vector<8x16xf32>
    %155 = arith.subf %151, %154 : vector<8x16xf32>
    %156 = math.exp %155 : vector<8x16xf32>
    %cst_57 = arith.constant dense<0.000000e+00> : vector<16xf32>
    %157 = vector.multi_reduction <add>, %156, %cst_57 [0] : vector<8x16xf32> to vector<16xf32>
    %158 = vector.shape_cast %157 : vector<16xf32> to vector<1x16xf32>
    %159 = math.log %158 : vector<1x16xf32>
    %160 = vector.broadcast %159 : vector<1x16xf32> to vector<8x16xf32>
    %161 = arith.subf %155, %160 : vector<8x16xf32>
    %c1 = arith.constant 1 : index
    %c0_58 = arith.constant 0 : index
    %c0_59 = arith.constant 0 : index
    %162 = vector.load %arg7[%c1, %c0_58, %c0_59] : memref<2x8x16xf32, #tpu.memory_space<vmem>>, vector<1x8x16xf32>
    %163 = vector.shape_cast %162 : vector<1x8x16xf32> to vector<8x16xf32>
    %164 = vector.shape_cast %161 : vector<8x16xf32> to vector<1x8x16xf32>
    tpu.vector_store %arg7[%c1, %c0_58, %c0_59], %164 {strides = array<i32>} : memref<2x8x16xf32, #tpu.memory_space<vmem>>, vector<1x8x16xf32>,
    return
  }
  func.func @transform_0(%arg0: i32) -> (i32, i32) {
    %c0_i32 = arith.constant 0 : i32
    %c0_i32_0 = arith.constant 0 : i32
    %c0_i32_1 = arith.constant 0 : i32
    return %c0_i32, %c0_i32_0 : i32, i32
  }
  func.func @transform_1(%arg0: i32) -> (i32, i32) {
    %c0_i32 = arith.constant 0 : i32
    %c0_i32_0 = arith.constant 0 : i32
    %c0_i32_1 = arith.constant 0 : i32
    return %c0_i32, %c0_i32_0 : i32, i32
  }
  func.func @transform_2(%arg0: i32) -> (i32, i32) {
    %c0_i32 = arith.constant 0 : i32
    %c0_i32_0 = arith.constant 0 : i32
    %c0_i32_1 = arith.constant 0 : i32
    return %c0_i32, %c0_i32_0 : i32, i32
  }
  func.func @transform_3(%arg0: i32) -> (i32, i32) {
    %c0_i32 = arith.constant 0 : i32
    %c0_i32_0 = arith.constant 0 : i32
    %c0_i32_1 = arith.constant 0 : i32
    return %c0_i32, %c0_i32_0 : i32, i32
  }
  func.func @transform_4(%arg0: i32) -> (i32, i32) {
    %c0_i32 = arith.constant 0 : i32
    %c0_i32_0 = arith.constant 0 : i32
    %c0_i32_1 = arith.constant 0 : i32
    return %c0_i32, %c0_i32_0 : i32, i32
  }
  func.func @transform_5(%arg0: i32) -> (i32, i32) {
    %c0_i32 = arith.constant 0 : i32
    %c0_i32_0 = arith.constant 0 : i32
    %c0_i32_1 = arith.constant 0 : i32
    return %c0_i32, %c0_i32_0 : i32, i32
  }
  func.func @transform_6(%arg0: i32) -> (i32, i32, i32) {
    %c0_i32 = arith.constant 0 : i32
    %c0_i32_0 = arith.constant 0 : i32
    %c0_i32_1 = arith.constant 0 : i32
    %c0_i32_2 = arith.constant 0 : i32
    return %c0_i32, %c0_i32_0, %c0_i32_1 : i32, i32, i32
  }
}

</mosaic_0001>

<bundles_post_ra>
// kernel: tpu_custom_call.1
= control target key start
LH: loop header
LB: loop body
LE: loop exit
PB: predicated region body
PF: predicated region fallthrough
CT: control target
= control target key end

     0   :  { %vm29_vm0 = vcmask 130048   ;;  %v1004_v5 = vmov 0.0|0.0   ;;  %vm1005_vm2 = vmmov 0   ;;  %v1006_v7 = vmov 0.0   ;;  %s1159_s0 = inlined_call_operand.vmem [shape: f32[16,16], index: 0, kind: input, shape index: {}]   ;;  %s1160_s1 = inlined_call_operand.vmem [shape: f32[8,8], index: 1, kind: input, shape index: {}]   ;;  %s1161_s2 = inlined_call_operand.vmem [shape: f32[16,33], index: 2, kind: input, shape index: {}]   ;;  %s1162_s3 = inlined_call_operand.vmem [shape: f32[1,16], index: 3, kind: input, shape index: {}]   ;;  %s1163_s4 = inlined_call_operand.vmem [shape: f32[32,17], index: 4, kind: input, shape index: {}]   ;;  %s1164_s5 = inlined_call_operand.vmem [shape: f32[1,32], index: 5, kind: input, shape index: {}]   ;;  %s1165_s6 = inlined_call_operand.hbm [shape: f32[2,8,16], index: 6, kind: output, shape index: {}]  }
   0x1   :  { %v27_v0 = vld [vmem:[%s1161_s2] sm:$0xff]  ;;  %v28_v1 = vld [vmem:[%s1161_s2 + $0x8] sm:$0xff]  ;;  %920 = vmatprep.subr.bf16.mxu1 %v1004_v5  ;;  %vm922_vm1 = vmpackc.low %vm29_vm0, %vm29_vm0  ;;  %875 = vmatprep.mubr.msk.f32.mxu1 %vm1005_vm2, %v1006_v7  ;;  %v1007_v8 = vmov 32  }
   0x2   :  { %v24_v2 = vld [vmem:[%s1159_s0] sm:$0xff]  ;;  %v916_v3 = vpack.c.bf16 %v28_v1, %v27_v0  ;;  %v25_v4 = vld [vmem:[%s1159_s0 + $0x8] sm:$0xff]  ;;  %945 = vset.pattern.permute.xlu0 %v1007_v8 }
   0x3   :  { %868 = vmatprep.mubr.msk.f32.mxu0 %vm29_vm0, %v24_v2  ;;  %v921_v6 = vpack.c.bf16 %v25_v4, %v24_v2 }
   0x4   :  { %11 = vsyncpa [#allocation3], 0  ;;  %917 = vmatprep.subr.bf16.mxu0 %v916_v3  ;;  %v111_v9 = vld [vmem:[%s1162_s3] sm:$0x1]  ;;  %v190_v14 = vlaneseq  ;;  %s1008_s3 = smov 120   ;;  %vm200_vm6 = vcmask 64512  }
   0x5   :  { %919 = vmatpush3.bf16.msra.mxu0 %v916_v3  ;;  %923 = vmatpush3.bf16.xpose.msk.msra.mxu1 %vm922_vm1, %v921_v6  ;;  %v1084_v25 = vld [vmem:[%s1160_s1] sm:$0xff]  ;;  %v396_v49 = vld [vmem:[%s1163_s4 + $0x8] sm:$0xff]  ;;  %v397_v51 = vld [vmem:[%s1163_s4 + $0x10] sm:$0xff]  ;;  %v1009_v54 = vmov 16   ;;  %vm399_vm7 = vcmask 261120  }
   0x6   :  { %878 = vmatprep.subr.mxu0 %v1006_v7  ;;  %v1075_v15 = vshrl.u32 %v190_v14, 7  ;;  %vm198_vm5 = vcmp.gt.f32.partialorder %v1084_v25, 0.0  ;;  %v395_v48 = vld [vmem:[%s1163_s4] sm:$0xff]  ;;  %v398_v52 = vld [vmem:[%s1163_s4 + $0x18] sm:$0xff]  ;;  %947 = vset.pattern.permute.xlu1 %v1009_v54  ;;  %vm934_vm10 = vmpackc.low %vm399_vm7, %vm399_vm7 }
   0x7   :  { %v924_v50 = vpack.c.bf16 %v396_v49, %v395_v48  ;;  %v928_v53 = vpack.c.bf16 %v398_v52, %v397_v51  ;;  %v481_v6 = vld [vmem:[%s1164_s5] sm:$0x1]  ;;  %s1010_s5 = smov [#allocation2]  }
   0x8   :  { %869 = vmatmul.mubr.msk.f32.vlgmr.msra.gmra.mrb[0].mxu0 %vm29_vm0, %v25_v4  ;;  %v192_v16 = vsub.s32 0, %v1075_v15  ;;  %s811_s15 = sshll.u32 %s1010_s5, 4  ;;  %s812_s15 = int_to_ptr.vmem [resolvable:$true] %s811_s15 }
   0x9   :  { %880 = vmatprep.mubr.msk.f32.mxu0 %vm1005_vm2, %v1006_v7  ;;  %925 = vmatprep.subr.bf16.mxu1 %v924_v50  ;;  %s980_s16 = scalar_lea.vmem %s812_s15, 256  ;;  %p985_p1 = scmp.lt.s32.totalorder %s812_s15, %s812_s15 }
   0xa   :  { %p981_p0 = scmp.ne.s32.totalorder %s812_s15, %s980_s16  ;;  %p986_p2 = scmp.lt.s32.totalorder %s980_s16, %s980_s16 }
   0xc   :  { %876 = vmatmul.mubr.msk.f32.vlgmr.msra.gmra.mrb[0].mxu1 %vm29_vm0, %v111_v9  ;;  %p987_p3 = por %p986_p2, %p985_p1 }
   0xd   :  { %927 = vmatpush3.bf16.msra.mxu1 %v924_v50 }
   0xe   :  { %929 = vmatprep.subr.bf16.mxu1 %v928_v53  ;;  %p988_p4 = pnand %p987_p3, %p981_p0 }
  0x11   :  { %931 = vmatpush3.bf16.msra.mxu1 %v928_v53 }
  0x12   :  { %906 = vmatprep.subr.mxu1 %v1006_v7 }
  0xdb   :  { %v870_v10 = vpop.f32.mrb[0].mxu0 }
  0xdc   :  { %287 = vperm.xlu0 %945, %v870_v10   ;;  %v102_v11 = vpop.f32.mrb[1].mxu0 }
  0xdd   :  { %879 = vmatpush3.msra.mxu0 %v102_v11 }
  0xde   :  { %883 = vmatprep.subr.mxu0 %v1006_v7 }
  0xdf   :  { %v181_v12 = vpop.f32.mrb[0].mxu1 }
  0xe0   :  { %187 = vperm.xlu0 %945, %v102_v11   ;;  %v877_v13 = vpop.f32.mrb[1].mxu1  ;;  %v193_v17 = vrot.slane %v181_v12, %v192_v16 }
  0xe4   :  { %946 = vset.pattern.permute.xlu0 %v1009_v54 }
 0x15b   :  { %v288_v18 = vpop.permute.xlu0 %287 }
 0x15c   :  { %v290_v19 = vadd.f32 %v288_v18, %v193_v17 }
 0x15e   :  { %vm291_vm3 = vcmp.gt.f32.partialorder %v290_v19, 0.0  ;;  %v292_v20 = vmul.f32 0.2, %v290_v19 }
 0x15f   :  { %v188_v22 = vpop.permute.xlu0 %187 }
 0x160   :  { %v293_v21 = vsel %vm291_vm3, %v290_v19, %v292_v20  ;;  %v194_v23 = vadd.f32 %v193_v17, %v188_v22 }
 0x161   :  { %295 = vrot.lane.b32.xlu1 %v293_v21, %s1008_s3 }
 0x162   :  { %v196_v24 = vmul.f32 0.2, %v194_v23  ;;  %vm195_vm4 = vcmp.gt.f32.partialorder %v194_v23, 0.0 }
 0x164   :  { %v197_v26 = vsel %vm195_vm4, %v194_v23, %v196_v24 }
 0x165   :  { %v199_v27 = vsel %vm198_vm5, %v197_v26, -9e+15 }
 0x166   :  { %v201_v28 = vsel %vm200_vm6, %v199_v27, -inf }
 0x185   :  { %202 = vmax.xlane.f32.xlu1 %v201_v28 }
 0x1d3   :  { %v296_v29 = vpop.permute.xlu1 %295 }
 0x1d4   :  { %v298_v30 = vsel %vm198_vm5, %v296_v29, -9e+15 }
 0x1d5   :  { %v299_v31 = vsel %vm200_vm6, %v298_v30, -inf }
 0x1d6   :  { %300 = vmax.xlane.f32.xlu0 %v299_v31 }
 0x212   :  { %v203_v32 = vpop.xlane.xlu1 %202 }
 0x213   :  { %v204_v33 = vsub.f32 %v199_v27, %v203_v32 }
 0x215   :  { %v205_v34 = vmul.f32 1.442695, %v204_v33 }
 0x217   :  { %948 = vpow2.f32 %v205_v34 }
 0x221   :  { %v949_v35 = vpop.eup %948 }
 0x222   :  { %v207_v36 = vsel %vm200_vm6, %v949_v35, 0.0 }
 0x223   :  { %208 = vadd.xlane.f32.xlu0 %v207_v36 }
 0x263   :  { %v301_v37 = vpop.xlane.xlu0 %300 }
 0x264   :  { %v302_v38 = vsub.f32 %v298_v30, %v301_v37 }
 0x266   :  { %v303_v39 = vmul.f32 1.442695, %v302_v38 }
 0x268   :  { %950 = vpow2.f32 %v303_v39 }
 0x272   :  { %v951_v40 = vpop.eup %950 }
 0x273   :  { %v305_v41 = vsel %vm200_vm6, %v951_v40, 0.0 }
 0x274   :  { %306 = vadd.xlane.f32.xlu1 %v305_v41 }
 0x2b0   :  { %v209_v42 = vpop.xlane.xlu0 %208 }
 0x2b1   :  { %952 = vrcp.f32 %v209_v42 }
 0x2bb   :  { %v953_v43 = vpop.eup %952 }
 0x2bc   :  { %v211_v44 = vmul.f32 %v953_v43, %v949_v35 }
 0x2be   :  { %881 = vmatmul.mubr.msk.f32.vlgmr.msra.gmra.mrb[2].mxu0 %vm200_vm6, %v211_v44 }
 0x2bf   :  { %884 = vmatpush3.msra.mxu0 %v870_v10  ;;  %885 = vmatprep.mubr.msk.f32.mxu0 %vm1005_vm2, %v1006_v7 }
 0x2c0   :  { %932 = vmatprep.subr.bf16.mxu0 %v1004_v5 }
 0x301   :  { %v307_v45 = vpop.xlane.xlu1 %306 }
 0x302   :  { %954 = vrcp.f32 %v307_v45 }
 0x30c   :  { %v955_v46 = vpop.eup %954 }
 0x30d   :  { %v309_v47 = vmul.f32 %v955_v46, %v951_v40 }
 0x30f   :  { %886 = vmatmul.mubr.msk.f32.vlgmr.msra.gmra.mrb[4].mxu0 %vm200_vm6, %v309_v47 }
 0x310   :  { %903 = vmatprep.mubr.msk.f32.mxu0 %vm1005_vm2, %v1006_v7 }
 0x391   :  { %v281_v55 = vpop.f32.mrb[2].mxu0 }
 0x392   :  { %v385_v56 = vmin.f32 %v281_v55, 0.0  ;;  %v882_v57 = vpop.f32.mrb[3].mxu0  ;;  %vm383_vm8 = vcmp.gt.f32.partialorder %v281_v55, 0.0 }
 0x394   :  { %v387_v58 = vmul.f32 1.442695, %v385_v56 }
 0x396   :  { %956 = vpow2.f32 %v387_v58 }
 0x3a0   :  { %v957_v59 = vpop.eup %956 }
 0x3a1   :  { %v829_v60 = vadd.f32 -1.0, %v957_v59 }
 0x3a3   :  { %v393_v61 = vsel %vm383_vm8, %v281_v55, %v829_v60 }
 0x3a4   :  { %896 = vmatprep.mubr.msk.f32.mxu1 %vm399_vm7, %v393_v61 }
 0x3e2   :  { %v379_v62 = vpop.f32.mrb[4].mxu0 }
 0x3e3   :  { %v386_v63 = vmin.f32 %v379_v62, 0.0  ;;  %v887_v0 = vpop.f32.mrb[5].mxu0  ;;  %vm384_vm9 = vcmp.gt.f32.partialorder %v379_v62, 0.0 }
 0x3e5   :  { %v389_v1 = vmul.f32 1.442695, %v386_v63 }
 0x3e7   :  { %958 = vpow2.f32 %v389_v1 }
 0x3f1   :  { %v959_v2 = vpop.eup %958 }
 0x3f2   :  { %v830_v3 = vadd.f32 -1.0, %v959_v2 }
 0x3f4   :  { %v394_v4 = vsel %vm384_vm9, %v379_v62, %v830_v3 }
 0x3f5   :  { %v933_v5 = vpack.c.bf16 %v394_v4, %v393_v61  ;;  %897 = vmatmul.mubr.msk.f32.vlgmr.msra.gmra.mrb[2].mxu1 %vm399_vm7, %v394_v4 }
 0x3f6   :  { %908 = vmatprep.mubr.msk.f32.mxu1 %vm1005_vm2, %v1006_v7 }
 0x3f7   :  { %935 = vmatpush3.bf16.xpose.msk.msra.mxu0 %vm934_vm10, %v933_v5 }
 0x3f8   :  { %911 = vmatprep.subr.mxu0 %v1006_v7 }
 0x3fe   :  { %904 = vmatmul.mubr.msk.f32.vlgmr.msra.gmra.mrb[6].mxu0 %vm399_vm7, %v481_v6 }
 0x3ff   :  { %913 = vmatprep.mubr.msk.f32.mxu0 %vm1005_vm2, %v1006_v7 }
 0x4c8   :  { %v898_v8 = vpop.f32.mrb[2].mxu1 }
 0x4c9   :  { %655 = vperm.xlu0 %946, %v898_v8   ;;  %v472_v9 = vpop.f32.mrb[3].mxu1  ;;  %912 = vmatpush3.msra.mxu0 %v898_v8 }
 0x4ca   :  { %557 = vperm.xlu1 %947, %v472_v9   ;;  %907 = vmatpush3.msra.mxu1 %v472_v9 }
 0x4d1   :  { %v551_v10 = vpop.f32.mrb[6].mxu0 }
 0x4d2   :  { %v905_v11 = vpop.f32.mrb[7].mxu0  ;;  %v563_v12 = vrot.slane %v551_v10, %v192_v16 }
 0x548   :  { %v656_v13 = vpop.permute.xlu0 %655 }
 0x549   :  { %v658_v14 = vadd.f32 %v656_v13, %v563_v12  ;;  %v558_v19 = vpop.permute.xlu1 %557 }
 0x54a   :  { %v564_v7 = vadd.f32 %v563_v12, %v558_v19 }
 0x54b   :  { %v660_v17 = vmul.f32 0.2, %v658_v14  ;;  %vm659_vm11 = vcmp.gt.f32.partialorder %v658_v14, 0.0 }
 0x54c   :  { %v566_v20 = vmul.f32 0.2, %v564_v7  ;;  %vm565_vm12 = vcmp.gt.f32.partialorder %v564_v7, 0.0 }
 0x54d   :  { %v661_v18 = vsel %vm659_vm11, %v658_v14, %v660_v17 }
 0x54e   :  { %663 = vrot.lane.b32.xlu1 %v661_v18, %s1008_s3  ;;  %v567_v21 = vsel %vm565_vm12, %v564_v7, %v566_v20 }
 0x54f   :  { %v568_v22 = vsel %vm198_vm5, %v567_v21, -9e+15 }
 0x550   :  { %v569_v23 = vsel %vm200_vm6, %v568_v22, -inf }
 0x572   :  { %570 = vmax.xlane.f32.xlu1 %v569_v23 }
 0x5c0   :  { %v664_v15 = vpop.permute.xlu1 %663 }
 0x5c1   :  { %v666_v16 = vsel %vm198_vm5, %v664_v15, -9e+15 }
 0x5c2   :  { %v667_v24 = vsel %vm200_vm6, %v666_v16, -inf }
 0x5c3   :  { %668 = vmax.xlane.f32.xlu0 %v667_v24 }
 0x5ff   :  { %v571_v26 = vpop.xlane.xlu1 %570 }
 0x600   :  { %v572_v27 = vsub.f32 %v568_v22, %v571_v26 }
 0x602   :  { %v573_v28 = vmul.f32 1.442695, %v572_v27 }
 0x604   :  { %960 = vpow2.f32 %v573_v28 }
 0x60e   :  { %v961_v29 = vpop.eup %960 }
 0x60f   :  { %v575_v30 = vsel %vm200_vm6, %v961_v29, 0.0 }
 0x610   :  { %576 = vadd.xlane.f32.xlu1 %v575_v30 }
 0x650   :  { %v669_v31 = vpop.xlane.xlu0 %668 }
 0x651   :  { %v670_v32 = vsub.f32 %v666_v16, %v669_v31 }
 0x653   :  { %v671_v33 = vmul.f32 1.442695, %v670_v32 }
 0x655   :  { %962 = vpow2.f32 %v671_v33 }
 0x65f   :  { %v963_v34 = vpop.eup %962 }
 0x660   :  { %v673_v35 = vsel %vm200_vm6, %v963_v34, 0.0 }
 0x661   :  { %674 = vadd.xlane.f32.xlu1 %v673_v35 }
 0x69d   :  { %v577_v25 = vpop.xlane.xlu1 %576 }
 0x69e   :  { %964 = vrcp.f32 %v577_v25 }
 0x6a8   :  { %v965_v36 = vpop.eup %964 }
 0x6a9   :  { %v579_v37 = vmul.f32 %v965_v36, %v961_v29 }
 0x6ab   :  { %909 = vmatmul.mubr.msk.f32.vlgmr.msra.gmra.mrb[4].mxu1 %vm200_vm6, %v579_v37 }
 0x6ee   :  { %v675_v38 = vpop.xlane.xlu1 %674 }
 0x6ef   :  { %966 = vrcp.f32 %v675_v38 }
 0x6f9   :  { %v967_v39 = vpop.eup %966 }
 0x6fa   :  { %v677_v40 = vmul.f32 %v967_v39, %v963_v34 }
 0x6fc   :  { %914 = vmatmul.mubr.msk.f32.vlgmr.msra.gmra.mrb[8].mxu0 %vm200_vm6, %v677_v40 }
 0x77e   :  { %v649_v41 = vpop.f32.mrb[4].mxu1 }
 0x77f   :  { %v752_v42 = vmin.f32 %v649_v41, 0.0  ;;  %v910_v43 = vpop.f32.mrb[5].mxu1  ;;  %vm751_vm13 = vcmp.gt.f32.partialorder %v649_v41, 0.0 }
 0x781   :  { %v753_v44 = vmul.f32 1.442695, %v752_v42 }
 0x783   :  { %968 = vpow2.f32 %v753_v44 }
 0x78d   :  { %v969_v45 = vpop.eup %968 }
 0x78e   :  { %v838_v46 = vadd.f32 -1.0, %v969_v45 }
 0x790   :  { %v756_v47 = vsel %vm751_vm13, %v649_v41, %v838_v46 }
 0x791   :  { %v757_v48 = vsel %vm29_vm0, %v756_v47, -inf }
 0x792   :  { %v758_v49 = vrot.slane %v757_v48, 4 }
 0x794   :  { %v759_v50 = vmax.f32 %v757_v48, %v758_v49 }
 0x796   :  { %v760_v51 = vrot.slane %v759_v50, 2 }
 0x798   :  { %v761_v52 = vmax.f32 %v759_v50, %v760_v51 }
 0x79a   :  { %v762_v53 = vrot.slane %v761_v52, 1 }
 0x79c   :  { %v763_v54 = vmax.f32 %v761_v52, %v762_v53 }
 0x79e   :  { %v764_v55 = vsub.f32 %v756_v47, %v763_v54 }
 0x7a0   :  { %v765_v56 = vmul.f32 1.442695, %v764_v55 }
 0x7a2   :  { %970 = vpow2.f32 %v765_v56 }
 0x7ac   :  { %v971_v57 = vpop.eup %970 }
 0x7ad   :  { %v767_v58 = vsel %vm29_vm0, %v971_v57, 0.0 }
 0x7ae   :  { %v768_v59 = vrot.slane %v767_v58, 4 }
 0x7b0   :  { %v769_v60 = vadd.f32 %v768_v59, %v767_v58 }
 0x7b2   :  { %v770_v61 = vrot.slane %v769_v60, 2 }
 0x7b4   :  { %v771_v62 = vadd.f32 %v770_v61, %v769_v60 }
 0x7b6   :  { %v772_v63 = vrot.slane %v771_v62, 1 }
 0x7b8   :  { %v773_v0 = vadd.f32 %v772_v63, %v771_v62 }
 0x7ba   :  { %972 = vlog2.f32 %v773_v0 }
 0x7c4   :  { %v973_v1 = vpop.eup %972 }
 0x7c5   :  { %v775_v2 = vmul.f32 0.6931472, %v973_v1 }
 0x7c7   :  { %v776_v3 = vsub.f32 %v764_v55, %v775_v2 }
 0x7c9   :  { %777 = vst.msk [vmem:[#allocation2] sm:$0xff] %vm29_vm0, %v776_v3 }
 0x7cf   :  { %v747_v4 = vpop.f32.mrb[8].mxu0 }
 0x7d0   :  { %v779_v5 = vmin.f32 %v747_v4, 0.0  ;;  %v915_v6 = vpop.f32.mrb[9].mxu0  ;;  %vm778_vm14 = vcmp.gt.f32.partialorder %v747_v4, 0.0 }
 0x7d2   :  { %v780_v8 = vmul.f32 1.442695, %v779_v5 }
 0x7d4   :  { %974 = vpow2.f32 %v780_v8 }
 0x7de   :  { %v975_v9 = vpop.eup %974 }
 0x7df   :  { %v839_v10 = vadd.f32 -1.0, %v975_v9 }
 0x7e1   :  { %v783_v11 = vsel %vm778_vm14, %v747_v4, %v839_v10 }
 0x7e2   :  { %v784_v12 = vsel %vm29_vm0, %v783_v11, -inf }
 0x7e3   :  { %v785_v13 = vrot.slane %v784_v12, 4 }
 0x7e5   :  { %v786_v14 = vmax.f32 %v784_v12, %v785_v13 }
 0x7e7   :  { %v787_v17 = vrot.slane %v786_v14, 2 }
 0x7e9   :  { %v788_v18 = vmax.f32 %v786_v14, %v787_v17 }
 0x7eb   :  { %v789_v19 = vrot.slane %v788_v18, 1 }
 0x7ed   :  { %v790_v7 = vmax.f32 %v788_v18, %v789_v19 }
 0x7ef   :  { %v791_v20 = vsub.f32 %v783_v11, %v790_v7 }
 0x7f1   :  { %v792_v21 = vmul.f32 1.442695, %v791_v20 }
 0x7f3   :  { %976 = vpow2.f32 %v792_v21 }
 0x7fd   :  { %v977_v22 = vpop.eup %976 }
 0x7fe   :  { %v794_v23 = vsel %vm29_vm0, %v977_v22, 0.0 }
 0x7ff   :  { %v795_v15 = vrot.slane %v794_v23, 4 }
 0x801   :  { %v796_v16 = vadd.f32 %v795_v15, %v794_v23 }
 0x803   :  { %v797_v24 = vrot.slane %v796_v16, 2 }
 0x805   :  { %v798_v26 = vadd.f32 %v797_v24, %v796_v16 }
 0x807   :  { %v799_v27 = vrot.slane %v798_v26, 1 }
 0x809   :  { %v800_v28 = vadd.f32 %v799_v27, %v798_v26 }
 0x80b   :  { %978 = vlog2.f32 %v800_v28 }
 0x815   :  { %v979_v29 = vpop.eup %978 }
 0x816   :  { %v802_v30 = vmul.f32 0.6931472, %v979_v29 }
 0x818   :  { %v803_v31 = vsub.f32 %v791_v20, %v802_v30 }
 0x81a   :  { %805 = vst.msk [vmem:[#allocation2 + $0x8] sm:$0xff] %vm29_vm0, %v803_v31 }
 0x81b   :  { %991 = shalt.err (!%p988_p4)
}
 0x81c   :  { %s992_s19 = scalar_lea.hbm %s1165_s6, 256 }
 0x81d   :  { %p993_p5 = scmp.ne.s32.totalorder %s1165_s6, %s992_s19  ;;  %p996_p6 = scmp.lt.u32.totalorder %s992_s19, %s1165_s6 }
 0x81f   :  { %p998_p7 = pnand %p996_p6, %p993_p5 }
 0x821   :  { %1001 = shalt.err (!%p998_p7)
}
 0x822   :  { %s1011_s24 = smov 128   ;;  %s1012_s25 = smov 8  }
 0x823   :  { %817 = dma.vmem_to_hbm [thread:$0]  %s812_s15, 256, %s1165_s6, [#allocation3], %s1011_s24, %s1011_s24, %s1012_s25  }
 0x824   :  { %1002 = dma.done.wait [#allocation3], 256  }
 0x825   :  { %1003 = vsyncadd [#allocation3], 4294967040 }
 0x826   :  { %821 = vsyncpa [#allocation3], 1 }

</bundles_post_ra>
